<compile_context>
chip_gen: v6e
topology: v6e:2x2x1
jax: 0.10.0
libtpu: 0.0.40
codegen_flags: <defaults>
</compile_context>

<pallas_src>
import jax
import jax.numpy as jnp
from jax.experimental import pallas as pl
from jax.experimental.pallas import tpu as pltpu


def _round_up(n, m):
    return ((n + m - 1) // m) * m


def encoder_kernel(x_ref, w1_ref, b1_ref, w2_ref, b2_ref, out_ref):
    # fc1 + relu for one batch tile, entirely in VMEM, matmuls on the MXU.
    h = jnp.dot(x_ref[...], w1_ref[...], preferred_element_type=jnp.float32)
    h = jnp.maximum(h + b1_ref[...], 0.0)
    # Fused [mean | logvar] head: single narrow (TB, 2L) store so HBM
    # writeback is only 2L*4 bytes per row.
    z = jnp.dot(h.astype(w2_ref.dtype), w2_ref[...],
                preferred_element_type=jnp.float32) + b2_ref[...]
    out_ref[...] = z.astype(out_ref.dtype)


def prepare_params(params, compute_dtype=jnp.float32):
    """One-time prep: fuse mean/logvar heads into one (H, 2L) weight and
    optionally cast the matmul operands to bf16 (accumulation stays f32)."""
    w2 = jnp.concatenate([params["wm"], params["wl"]], axis=1)
    b2 = jnp.concatenate([params["bm"], params["bl"]], axis=1)
    return dict(
        w1=params["w1"].astype(compute_dtype),
        b1=params["b1"].astype(jnp.float32),
        w2=w2.astype(compute_dtype),
        b2=b2.astype(jnp.float32),
    )


def encoder_forward(x, prep, *, tile_b=4096):
    """x: (B, input_dim). prep: output of prepare_params()."""
    B, D = x.shape
    H = prep["w1"].shape[1]          # 64
    L2 = prep["w2"].shape[1]         # 2 * latent_dim
    L = L2 // 2
    cdt = prep["w1"].dtype
    x = x.astype(cdt)

    # Pad batch only up to a sublane multiple (8); the ragged last grid tile
    # (if B8 % TB != 0) is handled by Pallas boundary read-pad / write-mask.
    B8 = _round_up(max(B, 8), 8)
    if B8 != B:
        x = jnp.pad(x, ((0, B8 - B), (0, 0)))

    TB = min(_round_up(tile_b, 8), B8)
    # Keep >= 2 grid steps whenever possible so v7x's two TensorCores both
    # get work on the "parallel" batch axis.
    if TB == B8 and B8 >= 16:
        TB = _round_up(pl.cdiv(B8, 2), 8)
    grid = (pl.cdiv(B8, TB),)

    itemsize = jnp.dtype(cdt).itemsize
    flops = 2 * B8 * (D * H + H * L2)
    bytes_accessed = (itemsize * (B8 * D + D * H + H * L2)
                      + 4 * (H + L2) + 4 * B8 * L2)

    packed = pl.pallas_call(
        encoder_kernel,
        grid=grid,
        in_specs=[
            pl.BlockSpec((TB, D), lambda i: (i, 0)),   # x: tiled over batch
            pl.BlockSpec((D, H), lambda i: (0, 0)),    # weights stay resident
            pl.BlockSpec((1, H), lambda i: (0, 0)),
            pl.BlockSpec((H, L2), lambda i: (0, 0)),
            pl.BlockSpec((1, L2), lambda i: (0, 0)),
        ],
        out_specs=pl.BlockSpec((TB, L2), lambda i: (i, 0)),
        out_shape=jax.ShapeDtypeStruct((B8, L2), jnp.float32),
        compiler_params=pltpu.CompilerParams(
            dimension_semantics=("parallel",),
        ),
        cost_estimate=pl.CostEstimate(
            flops=flops, transcendentals=0, bytes_accessed=bytes_accessed),
    )(x, prep["w1"], prep["b1"], prep["w2"], prep["b2"])

    # Split the fused head and trim padded rows (layout plumbing only).
    return packed[:B, :L], packed[:B, L:]


def init_params(key, input_dim, latent_dim, hidden=64):
    # Deterministic synthetic init (shapes match the nn.Linear layers).
    k1, k2, k3, k4, k5, k6 = jax.random.split(key, 6)
    # Stored already transposed: (in, out). Biases as (1, out) for broadcast.
    return dict(
        w1=jax.random.normal(k1, (input_dim, hidden), jnp.float32) * 0.1,
        b1=jax.random.normal(k2, (1, hidden), jnp.float32) * 0.1,
        wm=jax.random.normal(k3, (hidden, latent_dim), jnp.float32) * 0.1,
        bm=jax.random.normal(k4, (1, latent_dim), jnp.float32) * 0.1,
        wl=jax.random.normal(k5, (hidden, latent_dim), jnp.float32) * 0.1,
        bl=jax.random.normal(k6, (1, latent_dim), jnp.float32) * 0.1,
    )


def encoder_ref(x, p):
    h = jnp.maximum(x @ p["w1"] + p["b1"], 0.0)
    return h @ p["wm"] + p["bm"], h @ p["wl"] + p["bl"]


if __name__ == "__main__":
    key = jax.random.PRNGKey(0)
    kx, kp, kx2, kx3 = jax.random.split(key, 4)

    batch, input_dim, latent_dim = 8, 32, 2
    x = jax.random.normal(kx, (batch, input_dim), jnp.float32)
    params = init_params(kp, input_dim, latent_dim)
    ref_mean, ref_logvar = encoder_ref(x, params)

    # f32 path (matches the reference tightly).
    prep32 = prepare_params(params, jnp.float32)
    z_mean, z_logvar = encoder_forward(x, prep32)
    jax.block_until_ready((z_mean, z_logvar))
    assert z_mean.shape == (batch, latent_dim)
    assert z_logvar.shape == (batch, latent_dim)
    assert jnp.allclose(z_mean, ref_mean, atol=1e-5), "z_mean mismatch"
    assert jnp.allclose(z_logvar, ref_logvar, atol=1e-5), "z_logvar mismatch"

    # Ragged batch (not a multiple of 8) -> pad-to-8 + 2-step grid.
    x2 = jax.random.normal(kx2, (10, input_dim), jnp.float32)
    m2, lv2 = encoder_forward(x2, prep32)
    jax.block_until_ready((m2, lv2))
    rm2, rlv2 = encoder_ref(x2, params)
    assert m2.shape == (10, latent_dim) and lv2.shape == (10, latent_dim)
    assert jnp.allclose(m2, rm2, atol=1e-5), "ragged z_mean mismatch"
    assert jnp.allclose(lv2, rlv2, atol=1e-5), "ragged z_logvar mismatch"

    # Ragged LAST GRID TILE (B8 % TB != 0) -> Pallas boundary masking path.
    x3 = jax.random.normal(kx3, (20, input_dim), jnp.float32)
    m3, lv3 = encoder_forward(x3, prep32, tile_b=16)
    jax.block_until_ready((m3, lv3))
    rm3, rlv3 = encoder_ref(x3, params)
    assert jnp.allclose(m3, rm3, atol=1e-5), "boundary z_mean mismatch"
    assert jnp.allclose(lv3, rlv3, atol=1e-5), "boundary z_logvar mismatch"

    # bf16 operands, f32 accumulate — the v6e/v7x fast path (looser tol).
    prep16 = prepare_params(params, jnp.bfloat16)
    m4, lv4 = encoder_forward(x, prep16)
    jax.block_until_ready((m4, lv4))
    assert jnp.allclose(m4, ref_mean, atol=5e-2, rtol=5e-2), "bf16 mean mismatch"
    assert jnp.allclose(lv4, ref_logvar, atol=5e-2, rtol=5e-2), "bf16 logvar mismatch"

    print("KERNEL_OK")
</pallas_src>

<mosaic_0001>
module attributes {stable_mosaic.version = 11 : i64} {
  func.func @encoder_kernel(%arg0: i32, %arg1: memref<8x32xf32, #tpu.memory_space<vmem>>, %arg2: memref<32x64xf32, #tpu.memory_space<vmem>>, %arg3: memref<1x64xf32, #tpu.memory_space<vmem>>, %arg4: memref<64x4xf32, #tpu.memory_space<vmem>>, %arg5: memref<1x4xf32, #tpu.memory_space<vmem>>, %arg6: memref<8x4xf32, #tpu.memory_space<vmem>>) attributes {dimension_semantics = [#tpu.dimension_semantics<parallel>], iteration_bounds = array<i64: 1>, scalar_prefetch = 0 : i64, scratch_operands = 0 : i64, tpu.core_type = #tpu.core_type<tc>, window_params = [{transform_indices = @transform_0, window_bounds = array<i64: 8, 32>}, {pipeline_mode = #tpu.pipeline_mode<synchronous>, transform_indices = @transform_1, window_bounds = array<i64: 32, 64>}, {pipeline_mode = #tpu.pipeline_mode<synchronous>, transform_indices = @transform_2, window_bounds = array<i64: 1, 64>}, {pipeline_mode = #tpu.pipeline_mode<synchronous>, transform_indices = @transform_3, window_bounds = array<i64: 64, 4>}, {pipeline_mode = #tpu.pipeline_mode<synchronous>, transform_indices = @transform_4, window_bounds = array<i64: 1, 4>}, {transform_indices = @transform_5, window_bounds = array<i64: 8, 4>}]} {
    %c0 = arith.constant 0 : index
    %c0_0 = arith.constant 0 : index
    %0 = vector.load %arg1[%c0, %c0_0] : memref<8x32xf32, #tpu.memory_space<vmem>>, vector<8x32xf32>
    %c0_1 = arith.constant 0 : index
    %c0_2 = arith.constant 0 : index
    %1 = vector.load %arg2[%c0_1, %c0_2] : memref<32x64xf32, #tpu.memory_space<vmem>>, vector<32x64xf32>
    %cst = arith.constant dense<0.000000e+00> : vector<8x64xf32>
    %2 = tpu.matmul %0, %1, %cst {dimension_numbers = #tpu.dot_dimension_numbers<[1], [0], [0], [1], [0, 0, 1, 1], [], []>} : vector<8x32xf32>, vector<32x64xf32>, vector<8x64xf32> -> vector<8x64xf32>
    %c0_3 = arith.constant 0 : index
    %c0_4 = arith.constant 0 : index
    %3 = vector.load %arg3[%c0_3, %c0_4] : memref<1x64xf32, #tpu.memory_space<vmem>>, vector<1x64xf32>
    %4 = vector.broadcast %3 : vector<1x64xf32> to vector<8x64xf32>
    %5 = arith.addf %2, %4 : vector<8x64xf32>
    %cst_5 = arith.constant 0.000000e+00 : f32
    %6 = vector.broadcast %cst_5 : f32 to vector<8x64xf32>
    %7 = arith.maximumf %5, %6 : vector<8x64xf32>
    %c0_6 = arith.constant 0 : index
    %c0_7 = arith.constant 0 : index
    %8 = vector.load %arg4[%c0_6, %c0_7] : memref<64x4xf32, #tpu.memory_space<vmem>>, vector<64x4xf32>
    %cst_8 = arith.constant dense<0.000000e+00> : vector<8x4xf32>
    %9 = tpu.matmul %7, %8, %cst_8 {dimension_numbers = #tpu.dot_dimension_numbers<[1], [0], [0], [1], [0, 0, 1, 1], [], []>} : vector<8x64xf32>, vector<64x4xf32>, vector<8x4xf32> -> vector<8x4xf32>
    %c0_9 = arith.constant 0 : index
    %c0_10 = arith.constant 0 : index
    %10 = vector.load %arg5[%c0_9, %c0_10] : memref<1x4xf32, #tpu.memory_space<vmem>>, vector<1x4xf32>
    %11 = vector.broadcast %10 : vector<1x4xf32> to vector<8x4xf32>
    %12 = arith.addf %9, %11 : vector<8x4xf32>
    %c0_11 = arith.constant 0 : index
    %c0_12 = arith.constant 0 : index
    %13 = vector.load %arg6[%c0_11, %c0_12] : memref<8x4xf32, #tpu.memory_space<vmem>>, vector<8x4xf32>
    tpu.vector_store %arg6[%c0_11, %c0_12], %12 {strides = array<i32>} : memref<8x4xf32, #tpu.memory_space<vmem>>, vector<8x4xf32>,
    return
  }
  func.func @transform_0(%arg0: i32) -> (i32, i32) {
    %c0_i32 = arith.constant 0 : i32
    %c0_i32_0 = arith.constant 0 : i32
    return %arg0, %c0_i32 : i32, i32
  }
  func.func @transform_1(%arg0: i32) -> (i32, i32) {
    %c0_i32 = arith.constant 0 : i32
    %c0_i32_0 = arith.constant 0 : i32
    %c0_i32_1 = arith.constant 0 : i32
    return %c0_i32, %c0_i32_0 : i32, i32
  }
  func.func @transform_2(%arg0: i32) -> (i32, i32) {
    %c0_i32 = arith.constant 0 : i32
    %c0_i32_0 = arith.constant 0 : i32
    %c0_i32_1 = arith.constant 0 : i32
    return %c0_i32, %c0_i32_0 : i32, i32
  }
  func.func @transform_3(%arg0: i32) -> (i32, i32) {
    %c0_i32 = arith.constant 0 : i32
    %c0_i32_0 = arith.constant 0 : i32
    %c0_i32_1 = arith.constant 0 : i32
    return %c0_i32, %c0_i32_0 : i32, i32
  }
  func.func @transform_4(%arg0: i32) -> (i32, i32) {
    %c0_i32 = arith.constant 0 : i32
    %c0_i32_0 = arith.constant 0 : i32
    %c0_i32_1 = arith.constant 0 : i32
    return %c0_i32, %c0_i32_0 : i32, i32
  }
  func.func @transform_5(%arg0: i32) -> (i32, i32) {
    %c0_i32 = arith.constant 0 : i32
    %c0_i32_0 = arith.constant 0 : i32
    return %arg0, %c0_i32 : i32, i32
  }
}

</mosaic_0001>

<bundles_post_ra>
// kernel: tpu_custom_call.1
= control target key start
LH: loop header
LB: loop body
LE: loop exit
PB: predicated region body
PF: predicated region fallthrough
CT: control target
= control target key end

     0   :  { %v252_v0 = vmov 0.0   ;;  %vm253_vm0 = vmmov 0   ;;  %vm32_vm1 = vcmask 261120   ;;  %vm122_vm2 = vcmask 523264   ;;  %s334_s1 = inlined_call_operand.vmem [shape: f32[32,64], index: 1, kind: input, shape index: {}]   ;;  %s335_s3 = inlined_call_operand.vmem [shape: f32[64,4], index: 3, kind: input, shape index: {}]   ;;  %s336_s0 = inlined_call_operand.vmem [shape: f32[8,32], index: 0, kind: input, shape index: {}]   ;;  %s337_s2 = inlined_call_operand.vmem [shape: f32[1,64], index: 2, kind: input, shape index: {}]   ;;  %s338_s4 = inlined_call_operand.vmem [shape: f32[1,4], index: 4, kind: input, shape index: {}]   ;;  %s339_s5 = inlined_call_operand.vmem [shape: f32[8,4], index: 5, kind: output, shape index: {}]  }
   0x1   :  { %220 = vmatprep.subr.mxu0 %v252_v0  ;;  %v24_v1 = vld [vmem:[%s334_s1 + $0x18] sm:$0xff]  ;;  %v23_v2 = vld [vmem:[%s334_s1 + $0x10] sm:$0xff]  ;;  %228 = vmatprep.mubr.msk.f32.mxu0 %vm253_vm0, %v252_v0  ;;  %v22_v4 = vld [vmem:[%s334_s1 + $0x8] sm:$0xff]  ;;  %vm196_vm3 = vcmask 31744  }
   0x2   :  { %221 = vmatpush3.msra.mxu0 %v24_v1  ;;  %231 = vmatprep.subr.mxu1 %v252_v0  ;;  %v114_v3 = vld [vmem:[%s335_s3 + $0x38] sm:$0xff]  ;;  %v113_v5 = vld [vmem:[%s335_s3 + $0x30] sm:$0xff]  ;;  %v112_v6 = vld [vmem:[%s335_s3 + $0x28] sm:$0xff] }
   0x3   :  { %222 = vmatprep.subr.mxu0 %v252_v0  ;;  %232 = vmatpush3.msra.mxu1 %v114_v3  ;;  %v21_v7 = vld [vmem:[%s334_s1] sm:$0xff]  ;;  %v110_v10 = vld [vmem:[%s335_s3 + $0x18] sm:$0xff]  ;;  %v109_v11 = vld [vmem:[%s335_s3 + $0x10] sm:$0xff] }
   0x4   :  { %223 = vmatpush3.msra.mxu0 %v23_v2  ;;  %233 = vmatprep.subr.mxu1 %v252_v0  ;;  %v20_v8 = vld [vmem:[%s336_s0] sm:$0xff]  ;;  %v108_v12 = vld [vmem:[%s335_s3 + $0x8] sm:$0xff] }
   0x5   :  { %224 = vmatprep.subr.mxu0 %v252_v0  ;;  %234 = vmatpush3.msra.mxu1 %v113_v5  ;;  %v111_v9 = vld [vmem:[%s335_s3 + $0x20] sm:$0xff] }
   0x6   :  { %225 = vmatpush3.msra.mxu0 %v22_v4  ;;  %235 = vmatprep.subr.mxu1 %v252_v0  ;;  %v107_v13 = vld [vmem:[%s335_s3] sm:$0xff] }
   0x7   :  { %226 = vmatprep.subr.mxu0 %v252_v0  ;;  %236 = vmatpush3.msra.mxu1 %v112_v6  ;;  %v202_v14 = vld [vmem:[%s337_s2] ss:$0 sm:$0xff] }
   0x8   :  { %227 = vmatpush3.msra.mxu0 %v21_v7  ;;  %237 = vmatprep.subr.mxu1 %v252_v0  ;;  %v204_v19 = vld [vmem:[%s338_s4] ss:$0 sm:$0xff] }
   0x9   :  { %229 = vmatmul.mubr.msk.f32.vlgmr.msra.gmra.mxu0 %vm32_vm1, %v20_v8  ;;  %238 = vmatpush3.msra.mxu1 %v111_v9 }
   0xa   :  { %239 = vmatprep.subr.mxu1 %v252_v0  ;;  %247 = vmatprep.mubr.msk.f32.mxu1 %vm253_vm0, %v252_v0 }
   0xb   :  { %240 = vmatpush3.msra.mxu1 %v110_v10 }
   0xc   :  { %241 = vmatprep.subr.mxu1 %v252_v0 }
   0xd   :  { %242 = vmatpush3.msra.mxu1 %v109_v11 }
   0xe   :  { %243 = vmatprep.subr.mxu1 %v252_v0 }
   0xf   :  { %244 = vmatpush3.msra.mxu1 %v108_v12 }
  0x10   :  { %245 = vmatprep.subr.mxu1 %v252_v0 }
  0x11   :  { %246 = vmatpush3.msra.mxu1 %v107_v13 }
  0xc9   :  { %v102_v15 = vpop.f32.mrf.mxu0 }
  0xca   :  { %v103_v16 = vadd.f32 %v202_v14, %v102_v15 }
  0xcb   :  { %v230_v17 = vpop.f32.mrf.mxu0 }
  0xcc   :  { %v106_v18 = vmax.f32 %v103_v16, 0.0 }
  0xce   :  { %248 = vmatmul.mubr.msk.f32.vlgmr.msra.gmra.mxu1 %vm122_vm2, %v106_v18 }
 0x18e   :  { %v192_v20 = vpop.f32.mrf.mxu1 }
 0x18f   :  { %v193_v21 = vadd.f32 %v204_v19, %v192_v20 }
 0x190   :  { %v249_v22 = vpop.f32.mrf.mxu1 }
 0x191   :  { %197 = vst.msk [vmem:[%s339_s5] sm:$0xff] %vm196_vm3, %v193_v21 }

</bundles_post_ra>
